<compile_context>
chip_gen: v7x
topology: tpu7x:2x2x1
jax: 0.10.0
libtpu: 0.0.40
codegen_flags: <defaults>
</compile_context>

<pallas_src>
import jax
import jax.numpy as jnp
from jax.experimental import pallas as pl
from jax.experimental.pallas import tpu as pltpu

LANE = 128          # vreg lane width
SUBLANE_BF16 = 16   # bf16 sublane packing (also covers the f32 requirement of 8)


def _round_up(n, m):
    return ((n + m - 1) // m) * m


def mlp_kernel(x_ref,
               w1_ref, b1_ref,
               w2_ref, b2_ref,
               w3_ref, b3_ref,
               w4_ref, b4_ref,
               o_ref):
    # x arrives as f32 straight from HBM; cast to bf16 here (free VPU op) instead of
    # paying a separate wrapper-side HBM pass.
    x = x_ref[...].astype(jnp.bfloat16)
    # Layer 1: Linear + ReLU   (Dropout(0.3) is identity at inference)
    h = jnp.dot(x, w1_ref[...], preferred_element_type=jnp.float32)
    h = jnp.maximum(h + b1_ref[...], 0.0).astype(jnp.bfloat16)
    # Layer 2: Linear + ReLU   (Dropout(0.3) is identity at inference)
    h = jnp.dot(h, w2_ref[...], preferred_element_type=jnp.float32)
    h = jnp.maximum(h + b2_ref[...], 0.0).astype(jnp.bfloat16)
    # Layer 3: Linear + ReLU
    h = jnp.dot(h, w3_ref[...], preferred_element_type=jnp.float32)
    h = jnp.maximum(h + b3_ref[...], 0.0).astype(jnp.bfloat16)
    # Layer 4: Linear (logits) — lane-dense (128-padded) bf16 store
    out = jnp.dot(h, w4_ref[...], preferred_element_type=jnp.float32) + b4_ref[...]
    o_ref[...] = out.astype(o_ref.dtype)


def prepare_params(params):
    """One-time (load-time) padding + bf16 cast of the weights.

    Accepts PyTorch-layout-agnostic params: w* as [in_features, out_features],
    b* as 1-D (fan_out,) or 2-D (1, fan_out). Returns a dict of padded device
    arrays plus shape metadata; reuse it across forward calls.
    """
    w1 = jnp.asarray(params["w1"]); w2 = jnp.asarray(params["w2"])
    w3 = jnp.asarray(params["w3"]); w4 = jnp.asarray(params["w4"])
    input_size = w1.shape[0]
    output_size = w4.shape[1]

    d_in  = _round_up(input_size, LANE)
    h1p   = _round_up(w1.shape[1], LANE)   # 128
    h2p   = _round_up(w2.shape[1], LANE)   # 64  -> 128
    h3p   = _round_up(w3.shape[1], LANE)   # 32  -> 128
    d_out = _round_up(output_size, LANE)

    def pad_w(w, rows, cols):
        out = jnp.zeros((rows, cols), jnp.bfloat16)
        return out.at[:w.shape[0], :w.shape[1]].set(w.astype(jnp.bfloat16))

    def pad_b(b, cols):
        b = jnp.asarray(b, jnp.float32).reshape(1, -1)   # defensive: accept 1-D biases
        out = jnp.zeros((1, cols), jnp.float32)
        return out.at[:, :b.shape[1]].set(b)

    return {
        "w1": pad_w(w1, d_in, h1p),  "b1": pad_b(params["b1"], h1p),
        "w2": pad_w(w2, h1p,  h2p),  "b2": pad_b(params["b2"], h2p),
        "w3": pad_w(w3, h2p,  h3p),  "b3": pad_b(params["b3"], h3p),
        "w4": pad_w(w4, h3p, d_out), "b4": pad_b(params["b4"], d_out),
        "input_size": input_size, "output_size": output_size,
        "d_in": d_in, "d_out": d_out,
        "h1p": h1p, "h2p": h2p, "h3p": h3p,
    }


def disease_prediction_forward(x, prepared, *, tile_b=1024):
    """x: [batch, input_size] float32.  prepared: output of prepare_params().

    Returns [batch, output_size] float32 logits.
    """
    batch, input_size = x.shape
    assert input_size == prepared["input_size"], (input_size, prepared["input_size"])
    d_in, d_out = prepared["d_in"], prepared["d_out"]
    h1p, h2p, h3p = prepared["h1p"], prepared["h2p"], prepared["h3p"]
    output_size = prepared["output_size"]

    # --- minimal batch/feature padding (only when actually required) ---------------
    padded_batch = _round_up(batch, SUBLANE_BF16)
    pad_rows = padded_batch - batch
    pad_cols = d_in - input_size
    x_in = jnp.pad(x, ((0, pad_rows), (0, pad_cols))) if (pad_rows or pad_cols) else x

    # --- batch tiling ----------------------------------------------------------------
    # VMEM is never the constraint (few-MiB footprint vs 64-128 MiB); step count is.
    # For large batches shrink the tile so there are >= ~8 grid steps (>= 4 per core
    # when the "parallel" batch axis is sharded across v7x's 2 TensorCores), keeping the
    # x/out DMA pipeline overlapped; tiles never drop below 256 rows so the ~0.35 us
    # per-step overhead stays amortized on v5e/v6e.
    tb = min(tile_b, padded_batch)
    if padded_batch >= 8 * 256:
        tb = min(tb, _round_up(pl.cdiv(padded_batch, 8), SUBLANE_BF16))
    tb = max((tb // SUBLANE_BF16) * SUBLANE_BF16, SUBLANE_BF16)
    grid = (pl.cdiv(padded_batch, tb),)   # ragged last tile handled by Pallas

    # x / out tiles stream with the grid; weights & biases use constant index_maps so
    # they are fetched once and stay resident in VMEM across all grid steps.
    x_spec   = pl.BlockSpec((tb, d_in),  lambda i: (i, 0))
    out_spec = pl.BlockSpec((tb, d_out), lambda i: (i, 0))

    def resident(shape):
        return pl.BlockSpec(shape, lambda i: (0, 0))

    in_specs = [
        x_spec,
        resident((d_in, h1p)),  resident((1, h1p)),
        resident((h1p,  h2p)),  resident((1, h2p)),
        resident((h2p,  h3p)),  resident((1, h3p)),
        resident((h3p, d_out)), resident((1, d_out)),
    ]

    out_padded = pl.pallas_call(
        mlp_kernel,
        out_shape=jax.ShapeDtypeStruct((padded_batch, d_out), jnp.bfloat16),
        grid=grid,
        in_specs=in_specs,
        out_specs=out_spec,
        compiler_params=pltpu.CompilerParams(
            dimension_semantics=("parallel",)),   # 2-TC sharding on v7x; no-op elsewhere
    )(x_in,
      prepared["w1"], prepared["b1"],
      prepared["w2"], prepared["b2"],
      prepared["w3"], prepared["b3"],
      prepared["w4"], prepared["b4"])

    # Single small epilogue: slice the real logits out of the bf16 padded slab and
    # restore f32 to match the PyTorch module's output dtype.
    # TODO(synk): fuse softmax/argmax here if the serving path only needs class ids.
    return out_padded[:batch, :output_size].astype(jnp.float32)


def init_params(key, input_size, output_size):
    """Deterministic synthetic parameter init (PyTorch-style uniform bounds)."""
    dims = [(input_size, 128), (128, 64), (64, 32), (32, output_size)]
    params = {}
    for i, (fan_in, fan_out) in enumerate(dims, start=1):
        key, kw, kb = jax.random.split(key, 3)
        bound = 1.0 / jnp.sqrt(float(fan_in))
        params[f"w{i}"] = jax.random.uniform(
            kw, (fan_in, fan_out), jnp.float32, minval=-bound, maxval=bound)
        # 1-D biases, PyTorch-style; prepare_params reshapes defensively.
        params[f"b{i}"] = jax.random.uniform(
            kb, (fan_out,), jnp.float32, minval=-bound, maxval=bound)
    return params


def reference_forward(x, p):
    """Pure-JAX reference matching the kernel's numerics (bf16 operands, f32 accumulate,
    bf16 logits rounded back to f32)."""
    def lin(h, w, b):
        return jnp.dot(h.astype(jnp.bfloat16), w.astype(jnp.bfloat16),
                       preferred_element_type=jnp.float32) + b.reshape(1, -1)
    h = jnp.maximum(lin(x, p["w1"], p["b1"]), 0.0)
    h = jnp.maximum(lin(h, p["w2"], p["b2"]), 0.0)
    h = jnp.maximum(lin(h, p["w3"], p["b3"]), 0.0)
    out = lin(h, p["w4"], p["b4"])
    return out.astype(jnp.bfloat16).astype(jnp.float32)


if __name__ == "__main__":
    key = jax.random.PRNGKey(0)
    key, kx, kp = jax.random.split(key, 3)

    batch = 4
    input_size = 128   # number of symptom features
    output_size = 16   # number of disease classes

    x = jax.random.uniform(kx, (batch, input_size), jnp.float32)
    params = init_params(kp, input_size, output_size)
    prepared = prepare_params(params)          # one-time, load-path padding/cast

    out = disease_prediction_forward(x, prepared)
    out = jax.block_until_ready(out)

    ref = reference_forward(x, params)
    assert out.shape == (batch, output_size), out.shape
    assert jnp.allclose(out, ref, atol=2e-2, rtol=2e-2), "mismatch vs pure-JAX reference"

    print("KERNEL_OK")
</pallas_src>

<mosaic_0001>
module attributes {stable_mosaic.version = 11 : i64} {
  func.func @mlp_kernel(%arg0: i32, %arg1: memref<16x128xf32, #tpu.memory_space<vmem>>, %arg2: memref<128x128xbf16, #tpu.memory_space<vmem>>, %arg3: memref<1x128xf32, #tpu.memory_space<vmem>>, %arg4: memref<128x128xbf16, #tpu.memory_space<vmem>>, %arg5: memref<1x128xf32, #tpu.memory_space<vmem>>, %arg6: memref<128x128xbf16, #tpu.memory_space<vmem>>, %arg7: memref<1x128xf32, #tpu.memory_space<vmem>>, %arg8: memref<128x128xbf16, #tpu.memory_space<vmem>>, %arg9: memref<1x128xf32, #tpu.memory_space<vmem>>, %arg10: memref<16x128xbf16, #tpu.memory_space<vmem>>) attributes {dimension_semantics = [#tpu.dimension_semantics<parallel>], iteration_bounds = array<i64: 1>, scalar_prefetch = 0 : i64, scratch_operands = 0 : i64, tpu.core_type = #tpu.core_type<tc>, window_params = [{transform_indices = @transform_0, window_bounds = array<i64: 16, 128>}, {pipeline_mode = #tpu.pipeline_mode<synchronous>, transform_indices = @transform_1, window_bounds = array<i64: 128, 128>}, {pipeline_mode = #tpu.pipeline_mode<synchronous>, transform_indices = @transform_2, window_bounds = array<i64: 1, 128>}, {pipeline_mode = #tpu.pipeline_mode<synchronous>, transform_indices = @transform_3, window_bounds = array<i64: 128, 128>}, {pipeline_mode = #tpu.pipeline_mode<synchronous>, transform_indices = @transform_4, window_bounds = array<i64: 1, 128>}, {pipeline_mode = #tpu.pipeline_mode<synchronous>, transform_indices = @transform_5, window_bounds = array<i64: 128, 128>}, {pipeline_mode = #tpu.pipeline_mode<synchronous>, transform_indices = @transform_6, window_bounds = array<i64: 1, 128>}, {pipeline_mode = #tpu.pipeline_mode<synchronous>, transform_indices = @transform_7, window_bounds = array<i64: 128, 128>}, {pipeline_mode = #tpu.pipeline_mode<synchronous>, transform_indices = @transform_8, window_bounds = array<i64: 1, 128>}, {transform_indices = @transform_9, window_bounds = array<i64: 16, 128>}]} {
    %c0 = arith.constant 0 : index
    %c0_0 = arith.constant 0 : index
    %0 = vector.load %arg1[%c0, %c0_0] : memref<16x128xf32, #tpu.memory_space<vmem>>, vector<16x128xf32>
    %1 = arith.truncf %0 : vector<16x128xf32> to vector<16x128xbf16>
    %c0_1 = arith.constant 0 : index
    %c0_2 = arith.constant 0 : index
    %2 = vector.load %arg2[%c0_1, %c0_2] : memref<128x128xbf16, #tpu.memory_space<vmem>>, vector<128x128xbf16>
    %cst = arith.constant dense<0.000000e+00> : vector<16x128xf32>
    %3 = tpu.matmul %1, %2, %cst {dimension_numbers = #tpu.dot_dimension_numbers<[1], [0], [0], [1], [0, 0, 1, 1], [], []>} : vector<16x128xbf16>, vector<128x128xbf16>, vector<16x128xf32> -> vector<16x128xf32>
    %c0_3 = arith.constant 0 : index
    %c0_4 = arith.constant 0 : index
    %4 = vector.load %arg3[%c0_3, %c0_4] : memref<1x128xf32, #tpu.memory_space<vmem>>, vector<1x128xf32>
    %5 = vector.broadcast %4 : vector<1x128xf32> to vector<16x128xf32>
    %6 = arith.addf %3, %5 : vector<16x128xf32>
    %cst_5 = arith.constant 0.000000e+00 : f32
    %7 = vector.broadcast %cst_5 : f32 to vector<16x128xf32>
    %8 = arith.maximumf %6, %7 : vector<16x128xf32>
    %9 = arith.truncf %8 : vector<16x128xf32> to vector<16x128xbf16>
    %c0_6 = arith.constant 0 : index
    %c0_7 = arith.constant 0 : index
    %10 = vector.load %arg4[%c0_6, %c0_7] : memref<128x128xbf16, #tpu.memory_space<vmem>>, vector<128x128xbf16>
    %cst_8 = arith.constant dense<0.000000e+00> : vector<16x128xf32>
    %11 = tpu.matmul %9, %10, %cst_8 {dimension_numbers = #tpu.dot_dimension_numbers<[1], [0], [0], [1], [0, 0, 1, 1], [], []>} : vector<16x128xbf16>, vector<128x128xbf16>, vector<16x128xf32> -> vector<16x128xf32>
    %c0_9 = arith.constant 0 : index
    %c0_10 = arith.constant 0 : index
    %12 = vector.load %arg5[%c0_9, %c0_10] : memref<1x128xf32, #tpu.memory_space<vmem>>, vector<1x128xf32>
    %13 = vector.broadcast %12 : vector<1x128xf32> to vector<16x128xf32>
    %14 = arith.addf %11, %13 : vector<16x128xf32>
    %cst_11 = arith.constant 0.000000e+00 : f32
    %15 = vector.broadcast %cst_11 : f32 to vector<16x128xf32>
    %16 = arith.maximumf %14, %15 : vector<16x128xf32>
    %17 = arith.truncf %16 : vector<16x128xf32> to vector<16x128xbf16>
    %c0_12 = arith.constant 0 : index
    %c0_13 = arith.constant 0 : index
    %18 = vector.load %arg6[%c0_12, %c0_13] : memref<128x128xbf16, #tpu.memory_space<vmem>>, vector<128x128xbf16>
    %cst_14 = arith.constant dense<0.000000e+00> : vector<16x128xf32>
    %19 = tpu.matmul %17, %18, %cst_14 {dimension_numbers = #tpu.dot_dimension_numbers<[1], [0], [0], [1], [0, 0, 1, 1], [], []>} : vector<16x128xbf16>, vector<128x128xbf16>, vector<16x128xf32> -> vector<16x128xf32>
    %c0_15 = arith.constant 0 : index
    %c0_16 = arith.constant 0 : index
    %20 = vector.load %arg7[%c0_15, %c0_16] : memref<1x128xf32, #tpu.memory_space<vmem>>, vector<1x128xf32>
    %21 = vector.broadcast %20 : vector<1x128xf32> to vector<16x128xf32>
    %22 = arith.addf %19, %21 : vector<16x128xf32>
    %cst_17 = arith.constant 0.000000e+00 : f32
    %23 = vector.broadcast %cst_17 : f32 to vector<16x128xf32>
    %24 = arith.maximumf %22, %23 : vector<16x128xf32>
    %25 = arith.truncf %24 : vector<16x128xf32> to vector<16x128xbf16>
    %c0_18 = arith.constant 0 : index
    %c0_19 = arith.constant 0 : index
    %26 = vector.load %arg8[%c0_18, %c0_19] : memref<128x128xbf16, #tpu.memory_space<vmem>>, vector<128x128xbf16>
    %cst_20 = arith.constant dense<0.000000e+00> : vector<16x128xf32>
    %27 = tpu.matmul %25, %26, %cst_20 {dimension_numbers = #tpu.dot_dimension_numbers<[1], [0], [0], [1], [0, 0, 1, 1], [], []>} : vector<16x128xbf16>, vector<128x128xbf16>, vector<16x128xf32> -> vector<16x128xf32>
    %c0_21 = arith.constant 0 : index
    %c0_22 = arith.constant 0 : index
    %28 = vector.load %arg9[%c0_21, %c0_22] : memref<1x128xf32, #tpu.memory_space<vmem>>, vector<1x128xf32>
    %29 = vector.broadcast %28 : vector<1x128xf32> to vector<16x128xf32>
    %30 = arith.addf %27, %29 : vector<16x128xf32>
    %31 = arith.truncf %30 : vector<16x128xf32> to vector<16x128xbf16>
    %c0_23 = arith.constant 0 : index
    %c0_24 = arith.constant 0 : index
    %32 = vector.load %arg10[%c0_23, %c0_24] : memref<16x128xbf16, #tpu.memory_space<vmem>>, vector<16x128xbf16>
    tpu.vector_store %arg10[%c0_23, %c0_24], %31 {strides = array<i32>} : memref<16x128xbf16, #tpu.memory_space<vmem>>, vector<16x128xbf16>,
    return
  }
  func.func @transform_0(%arg0: i32) -> (i32, i32) {
    %c0_i32 = arith.constant 0 : i32
    %c0_i32_0 = arith.constant 0 : i32
    return %arg0, %c0_i32 : i32, i32
  }
  func.func @transform_1(%arg0: i32) -> (i32, i32) {
    %c0_i32 = arith.constant 0 : i32
    %c0_i32_0 = arith.constant 0 : i32
    %c0_i32_1 = arith.constant 0 : i32
    return %c0_i32, %c0_i32_0 : i32, i32
  }
  func.func @transform_2(%arg0: i32) -> (i32, i32) {
    %c0_i32 = arith.constant 0 : i32
    %c0_i32_0 = arith.constant 0 : i32
    %c0_i32_1 = arith.constant 0 : i32
    return %c0_i32, %c0_i32_0 : i32, i32
  }
  func.func @transform_3(%arg0: i32) -> (i32, i32) {
    %c0_i32 = arith.constant 0 : i32
    %c0_i32_0 = arith.constant 0 : i32
    %c0_i32_1 = arith.constant 0 : i32
    return %c0_i32, %c0_i32_0 : i32, i32
  }
  func.func @transform_4(%arg0: i32) -> (i32, i32) {
    %c0_i32 = arith.constant 0 : i32
    %c0_i32_0 = arith.constant 0 : i32
    %c0_i32_1 = arith.constant 0 : i32
    return %c0_i32, %c0_i32_0 : i32, i32
  }
  func.func @transform_5(%arg0: i32) -> (i32, i32) {
    %c0_i32 = arith.constant 0 : i32
    %c0_i32_0 = arith.constant 0 : i32
    %c0_i32_1 = arith.constant 0 : i32
    return %c0_i32, %c0_i32_0 : i32, i32
  }
  func.func @transform_6(%arg0: i32) -> (i32, i32) {
    %c0_i32 = arith.constant 0 : i32
    %c0_i32_0 = arith.constant 0 : i32
    %c0_i32_1 = arith.constant 0 : i32
    return %c0_i32, %c0_i32_0 : i32, i32
  }
  func.func @transform_7(%arg0: i32) -> (i32, i32) {
    %c0_i32 = arith.constant 0 : i32
    %c0_i32_0 = arith.constant 0 : i32
    %c0_i32_1 = arith.constant 0 : i32
    return %c0_i32, %c0_i32_0 : i32, i32
  }
  func.func @transform_8(%arg0: i32) -> (i32, i32) {
    %c0_i32 = arith.constant 0 : i32
    %c0_i32_0 = arith.constant 0 : i32
    %c0_i32_1 = arith.constant 0 : i32
    return %c0_i32, %c0_i32_0 : i32, i32
  }
  func.func @transform_9(%arg0: i32) -> (i32, i32) {
    %c0_i32 = arith.constant 0 : i32
    %c0_i32_0 = arith.constant 0 : i32
    return %arg0, %c0_i32 : i32, i32
  }
}

</mosaic_0001>

<bundles_post_ra>
// kernel: tpu_custom_call.1
= control target key start
LH: loop header
LB: loop body
LE: loop exit
PB: predicated region body
PF: predicated region fallthrough
CT: control target
= control target key end

     0   :  { %14 = vsyncpa [#allocation3], 0  ;;  %s1137_s0 = inlined_call_operand.hbm [shape: f32[16,128], index: 0, kind: input, shape index: {}]   ;;  %s1138_s1 = inlined_call_operand.hbm [shape: bf16[128,128], index: 1, kind: input, shape index: {}]   ;;  %s1139_s2 = inlined_call_operand.vmem [shape: f32[1,128], index: 2, kind: input, shape index: {}]   ;;  %s1140_s3 = inlined_call_operand.hbm [shape: bf16[128,128], index: 3, kind: input, shape index: {}]   ;;  %s1141_s4 = inlined_call_operand.vmem [shape: f32[1,128], index: 4, kind: input, shape index: {}]   ;;  %s1142_s5 = inlined_call_operand.hbm [shape: bf16[128,128], index: 5, kind: input, shape index: {}]   ;;  %s1143_s6 = inlined_call_operand.vmem [shape: f32[1,128], index: 6, kind: input, shape index: {}]   ;;  %s1144_s7 = inlined_call_operand.hbm [shape: bf16[128,128], index: 7, kind: input, shape index: {}]   ;;  %s1145_s8 = inlined_call_operand.vmem [shape: f32[1,128], index: 8, kind: input, shape index: {}]   ;;  %s1146_s9 = inlined_call_operand.hbm [shape: bf16[16,128], index: 9, kind: output, shape index: {}]  }
   0x1   :  { %15 = vsyncpa [#allocation6], 0 }
   0x2   :  { %16 = vsyncpa [#allocation9], 0 }
   0x3   :  { %17 = vsyncpa [#allocation4], 0  ;;  %s936_s30 = smov [#allocation5]   ;;  %s796_s13 = scalar_lea.hbm %s1138_s1, 1024 }
   0x4   :  { %s35_s10 = sshll.u32 %s936_s30, 4  ;;  %p797_p0 = scmp.ne.s32.totalorder %s1138_s1, %s796_s13  ;;  %s36_s10 = int_to_ptr.vmem [resolvable:$true] %s35_s10 }
   0x5   :  { %p800_p1 = scmp.lt.u32.totalorder %s796_s13, %s1138_s1 }
   0x7   :  { %p802_p2 = pnand %p800_p1, %p797_p0 }
   0x9   :  { %805 = shalt.err (!%p802_p2)
}
   0xa   :  { %s806_s18 = scalar_lea.vmem %s36_s10, 1024  ;;  %p811_p4 = scmp.lt.s32.totalorder %s36_s10, %s36_s10 }
   0xb   :  { %p807_p3 = scmp.ne.s32.totalorder %s36_s10, %s806_s18  ;;  %p812_p5 = scmp.lt.s32.totalorder %s806_s18, %s806_s18 }
   0xd   :  { %p813_p6 = por %p812_p5, %p811_p4 }
   0xf   :  { %p814_p7 = pnand %p813_p6, %p807_p3 }
  0x11   :  { %817 = shalt.err (!%p814_p7)
}
  0x12   :  { %s937_s19 = smov 64   ;;  %s938_s20 = smov 4  }
  0x13   :  { %41 = dma.hbm_to_vmem [thread:$0]  %s1138_s1, 1024, %s36_s10, [#allocation6], %s937_s19, %s937_s19, %s938_s20  }
  0x14   :  { %s939_s23 = smov [#allocation8]   ;;  %s940_s25 = smov [#allocation2]  }
  0x15   :  { %s63_s24 = sshll.u32 %s939_s23, 4  ;;  %s23_s26 = sshll.u32 %s940_s25, 4  ;;  %s64_s24 = int_to_ptr.vmem [resolvable:$true] %s63_s24  ;;  %s24_s26 = int_to_ptr.vmem [resolvable:$true] %s23_s26 }
  0x16   :  { %s818_s29 = scalar_lea.hbm %s1142_s5, 1024 }
  0x17   :  { %p819_p8 = scmp.ne.s32.totalorder %s1142_s5, %s818_s29  ;;  %p822_p9 = scmp.lt.u32.totalorder %s818_s29, %s1142_s5 }
  0x19   :  { %p824_p10 = pnand %p822_p9, %p819_p8 }
  0x1b   :  { %827 = shalt.err (!%p824_p10)
}
  0x1c   :  { %s828_s1 = scalar_lea.vmem %s64_s24, 1024  ;;  %p833_p12 = scmp.lt.s32.totalorder %s64_s24, %s64_s24 }
  0x1d   :  { %p829_p11 = scmp.ne.s32.totalorder %s64_s24, %s828_s1  ;;  %p834_p13 = scmp.lt.s32.totalorder %s828_s1, %s828_s1 }
  0x1f   :  { %p835_p0 = por %p834_p13, %p833_p12 }
  0x21   :  { %p836_p1 = pnand %p835_p0, %p829_p11 }
  0x23   :  { %839 = shalt.err (!%p836_p1)
}
  0x24   :  { %69 = dma.hbm_to_vmem [thread:$0]  %s1142_s5, 1024, %s64_s24, [#allocation9], %s937_s19, %s937_s19, %s938_s20  }
  0x25   :  { %s840_s17 = scalar_lea.hbm %s1137_s0, 256 }
  0x26   :  { %p841_p2 = scmp.ne.s32.totalorder %s1137_s0, %s840_s17  ;;  %p844_p3 = scmp.lt.u32.totalorder %s840_s17, %s1137_s0 }
  0x28   :  { %p846_p4 = pnand %p844_p3, %p841_p2 }
  0x2a   :  { %849 = shalt.err (!%p846_p4)
}
  0x2b   :  { %s850_s25 = scalar_lea.vmem %s24_s26, 256  ;;  %p855_p6 = scmp.lt.s32.totalorder %s24_s26, %s24_s26 }
  0x2c   :  { %p851_p5 = scmp.ne.s32.totalorder %s24_s26, %s850_s25  ;;  %p856_p7 = scmp.lt.s32.totalorder %s850_s25, %s850_s25 }
  0x2e   :  { %p857_p8 = por %p856_p7, %p855_p6 }
  0x30   :  { %p858_p9 = pnand %p857_p8, %p851_p5 }
  0x32   :  { %861 = shalt.err (!%p858_p9)
}
  0x33   :  { %s941_s5 = smov 128   ;;  %s942_s24 = smov 8  }
  0x34   :  { %29 = dma.hbm_to_vmem [thread:$0]  %s1137_s0, 256, %s24_s26, [#allocation3], %s941_s5, %s941_s5, %s942_s24  }
  0x35   :  { %s943_s29 = smov [#allocation7]   ;;  %s944_s11 = smov [#allocation10]  }
  0x36   :  { %s49_s30 = sshll.u32 %s943_s29, 4  ;;  %s77_s12 = sshll.u32 %s944_s11, 4  ;;  %s50_s30 = int_to_ptr.vmem [resolvable:$true] %s49_s30  ;;  %s78_s12 = int_to_ptr.vmem [resolvable:$true] %s77_s12 }
  0x37   :  { %s862_s10 = scalar_lea.hbm %s1140_s3, 1024 }
  0x38   :  { %p863_p10 = scmp.ne.s32.totalorder %s1140_s3, %s862_s10  ;;  %p866_p11 = scmp.lt.u32.totalorder %s862_s10, %s1140_s3 }
  0x3a   :  { %p868_p12 = pnand %p866_p11, %p863_p10 }
  0x3c   :  { %871 = shalt.err (!%p868_p12)
}
  0x3d   :  { %s872_s0 = scalar_lea.vmem %s50_s30, 1024  ;;  %p877_p0 = scmp.lt.s32.totalorder %s50_s30, %s50_s30 }
  0x3e   :  { %p873_p13 = scmp.ne.s32.totalorder %s50_s30, %s872_s0  ;;  %p878_p1 = scmp.lt.s32.totalorder %s872_s0, %s872_s0 }
  0x40   :  { %p879_p2 = por %p878_p1, %p877_p0 }
  0x42   :  { %p880_p3 = pnand %p879_p2, %p873_p13 }
  0x44   :  { %883 = shalt.err (!%p880_p3)
}
  0x45   :  { %55 = dma.hbm_to_vmem [thread:$0]  %s1140_s3, 1024, %s50_s30, [#allocation6], %s937_s19, %s937_s19, %s938_s20  }
  0x46   :  { %s884_s23 = scalar_lea.hbm %s1144_s7, 1024 }
  0x47   :  { %p885_p4 = scmp.ne.s32.totalorder %s1144_s7, %s884_s23  ;;  %p888_p5 = scmp.lt.u32.totalorder %s884_s23, %s1144_s7 }
  0x49   :  { %p890_p6 = pnand %p888_p5, %p885_p4 }
  0x4b   :  { %893 = shalt.err (!%p890_p6)
}
  0x4c   :  { %s894_s28 = scalar_lea.vmem %s78_s12, 1024  ;;  %p899_p8 = scmp.lt.s32.totalorder %s78_s12, %s78_s12 }
  0x4d   :  { %p895_p7 = scmp.ne.s32.totalorder %s78_s12, %s894_s28  ;;  %p900_p9 = scmp.lt.s32.totalorder %s894_s28, %s894_s28 }
  0x4f   :  { %p901_p10 = por %p900_p9, %p899_p8 }
  0x51   :  { %p902_p11 = pnand %p901_p10, %p895_p7 }
  0x53   :  { %905 = shalt.err (!%p902_p11)
}
  0x54   :  { %83 = dma.hbm_to_vmem [thread:$0]  %s1144_s7, 1024, %s78_s12, [#allocation9], %s937_s19, %s937_s19, %s938_s20  }
  0x55   :  { %928 = dma.done.wait [#allocation3], 256  }
  0x56   :  { %929 = vsyncadd [#allocation3], 4294967040 }
  0x57   :  { %930 = dma.done.wait [#allocation6], 2048  }
  0x58   :  { %931 = vsyncadd [#allocation6], 4294965248 }
  0x59   :  { %932 = dma.done.wait [#allocation9], 2048  }
  0x5a   :  { %933 = vsyncadd [#allocation9], 4294965248  ;;  %v945_v0 = vmov 0.0   ;;  %vm946_vm0 = vmmov 0   ;;  %v764_v1 = vld [vmem:[#allocation5] sm:$0xff]   ;;  %v765_v2 = vld [vmem:[#allocation5 + $0x8] sm:$0xff]  }
  0x5b   :  { %672 = vmatprep.subr.bf16.mxu0 %v945_v0  ;;  %688 = vmatprep.mubr.msk.bf16.mxu0 %vm946_vm0, %v945_v0  ;;  %v766_v3 = vld [vmem:[#allocation5 + $0x10] sm:$0xff]   ;;  %v772_v4 = vld [vmem:[#allocation7] sm:$0xff]   ;;  %v767_v5 = vld [vmem:[#allocation5 + $0x18] sm:$0xff]   ;;  %s947_s10 = smov [#allocation11]  }
  0x5c   :  { %692 = vmatprep.subr.bf16.mxu1 %v945_v0  ;;  %708 = vmatprep.mubr.msk.bf16.mxu1 %vm946_vm0, %v945_v0  ;;  %v773_v6 = vld [vmem:[#allocation7 + $0x8] sm:$0xff]   ;;  %v768_v7 = vld [vmem:[#allocation5 + $0x20] sm:$0xff]   ;;  %v774_v8 = vld [vmem:[#allocation7 + $0x10] sm:$0xff]   ;;  %s577_s14 = sshll.u32 %s947_s10, 4  ;;  %s578_s14 = int_to_ptr.vmem [resolvable:$true] %s577_s14 }
  0x5d   :  { %673 = vmatpush3.bf16.msra.mxu0 %v764_v1  ;;  %693 = vmatpush3.bf16.msra.mxu1 %v772_v4  ;;  %v769_v9 = vld [vmem:[#allocation5 + $0x28] sm:$0xff]   ;;  %v775_v10 = vld [vmem:[#allocation7 + $0x18] sm:$0xff]   ;;  %v770_v11 = vld [vmem:[#allocation5 + $0x30] sm:$0xff]   ;;  %p911_p13 = scmp.lt.s32.totalorder %s578_s14, %s578_s14 }
  0x5e   :  { %674 = vmatprep.subr.bf16.mxu0 %v945_v0  ;;  %694 = vmatprep.subr.bf16.mxu1 %v945_v0  ;;  %v776_v12 = vld [vmem:[#allocation7 + $0x20] sm:$0xff]   ;;  %v771_v13 = vld [vmem:[#allocation5 + $0x38] sm:$0xff]   ;;  %v102_v14 = vld [vmem:[#allocation2] sm:$0xff] }
  0x5f   :  { %v103_v15 = vld [vmem:[#allocation2 + $0x8] sm:$0xff]  ;;  %v777_v16 = vld [vmem:[#allocation7 + $0x28] sm:$0xff]   ;;  %v778_v18 = vld [vmem:[#allocation7 + $0x30] sm:$0xff]  }
  0x60   :  { %v104_v17 = vpack.c.bf16 %v103_v15, %v102_v14  ;;  %v779_v19 = vld [vmem:[#allocation7 + $0x38] sm:$0xff]   ;;  %v780_v20 = vld [vmem:[#allocation8] sm:$0xff]   ;;  %v781_v21 = vld [vmem:[#allocation8 + $0x8] sm:$0xff]  }
  0x61   :  { %675 = vmatpush3.bf16.msra.mxu0 %v765_v2  ;;  %695 = vmatpush3.bf16.msra.mxu1 %v773_v6  ;;  %v782_v22 = vld [vmem:[#allocation8 + $0x10] sm:$0xff]   ;;  %v783_v23 = vld [vmem:[#allocation8 + $0x18] sm:$0xff]   ;;  %v784_v24 = vld [vmem:[#allocation8 + $0x20] sm:$0xff]  }
  0x62   :  { %676 = vmatprep.subr.bf16.mxu0 %v945_v0  ;;  %696 = vmatprep.subr.bf16.mxu1 %v945_v0  ;;  %v785_v25 = vld [vmem:[#allocation8 + $0x28] sm:$0xff]   ;;  %v591_v26 = vld [vmem:[%s1139_s2] ss:$0 sm:$0xff]  ;;  %v787_v37 = vld [vmem:[#allocation8 + $0x38] sm:$0xff]  }
  0x63   :  { %v786_v36 = vld [vmem:[#allocation8 + $0x30] sm:$0xff]   ;;  %v788_v38 = vld [vmem:[#allocation10] sm:$0xff]   ;;  %v789_v39 = vld [vmem:[#allocation10 + $0x8] sm:$0xff]  }
  0x64   :  { %v790_v40 = vld [vmem:[#allocation10 + $0x10] sm:$0xff]   ;;  %v791_v41 = vld [vmem:[#allocation10 + $0x18] sm:$0xff]   ;;  %v792_v42 = vld [vmem:[#allocation10 + $0x20] sm:$0xff]  }
  0x65   :  { %677 = vmatpush3.bf16.msra.mxu0 %v766_v3  ;;  %697 = vmatpush3.bf16.msra.mxu1 %v774_v8  ;;  %v793_v43 = vld [vmem:[#allocation10 + $0x28] sm:$0xff]   ;;  %v600_v44 = vld [vmem:[%s1141_s4] ss:$0 sm:$0xff]  ;;  %v795_v55 = vld [vmem:[#allocation10 + $0x38] sm:$0xff]  }
  0x66   :  { %678 = vmatprep.subr.bf16.mxu0 %v945_v0  ;;  %698 = vmatprep.subr.bf16.mxu1 %v945_v0  ;;  %v794_v54 = vld [vmem:[#allocation10 + $0x30] sm:$0xff]  }
  0x67   :  { %v609_v56 = vld [vmem:[%s1143_s6] ss:$0 sm:$0xff]  ;;  %s906_s6 = scalar_lea.vmem %s578_s14, 128 }
  0x68   :  { %p907_p12 = scmp.ne.s32.totalorder %s578_s14, %s906_s6  ;;  %p912_p0 = scmp.lt.s32.totalorder %s906_s6, %s906_s6 }
  0x69   :  { %679 = vmatpush3.bf16.msra.mxu0 %v767_v5  ;;  %699 = vmatpush3.bf16.msra.mxu1 %v775_v10 }
  0x6a   :  { %680 = vmatprep.subr.bf16.mxu0 %v945_v0  ;;  %700 = vmatprep.subr.bf16.mxu1 %v945_v0  ;;  %p913_p1 = por %p912_p0, %p911_p13 }
  0x6c   :  { %p914_p2 = pnand %p913_p1, %p907_p12 }
  0x6d   :  { %681 = vmatpush3.bf16.msra.mxu0 %v768_v7  ;;  %701 = vmatpush3.bf16.msra.mxu1 %v776_v12 }
  0x6e   :  { %682 = vmatprep.subr.bf16.mxu0 %v945_v0  ;;  %702 = vmatprep.subr.bf16.mxu1 %v945_v0 }
  0x71   :  { %683 = vmatpush3.bf16.msra.mxu0 %v769_v9  ;;  %703 = vmatpush3.bf16.msra.mxu1 %v777_v16 }
  0x72   :  { %684 = vmatprep.subr.bf16.mxu0 %v945_v0  ;;  %704 = vmatprep.subr.bf16.mxu1 %v945_v0 }
  0x75   :  { %685 = vmatpush3.bf16.msra.mxu0 %v770_v11  ;;  %705 = vmatpush3.bf16.msra.mxu1 %v778_v18 }
  0x76   :  { %686 = vmatprep.subr.bf16.mxu0 %v945_v0  ;;  %706 = vmatprep.subr.bf16.mxu1 %v945_v0 }
  0x79   :  { %687 = vmatpush3.bf16.msra.mxu0 %v771_v13  ;;  %707 = vmatpush3.bf16.msra.mxu1 %v779_v19 }
  0x7a   :  { %712 = vmatprep.subr.bf16.mxu0 %v945_v0  ;;  %732 = vmatprep.subr.bf16.mxu1 %v945_v0 }
  0x7c   :  { %689 = vmatmul.mubr.bf16.vlgmr.msra.gmra.mrb[0].mxu0 %v104_v17 }
  0x7d   :  { %728 = vmatprep.mubr.msk.bf16.mxu0 %vm946_vm0, %v945_v0  ;;  %713 = vmatpush3.bf16.msra.mxu0 %v780_v20 }
  0x7e   :  { %714 = vmatprep.subr.bf16.mxu0 %v945_v0 }
  0x81   :  { %715 = vmatpush3.bf16.msra.mxu0 %v781_v21 }
  0x82   :  { %716 = vmatprep.subr.bf16.mxu0 %v945_v0 }
  0x85   :  { %717 = vmatpush3.bf16.msra.mxu0 %v782_v22 }
  0x86   :  { %718 = vmatprep.subr.bf16.mxu0 %v945_v0 }
  0x89   :  { %719 = vmatpush3.bf16.msra.mxu0 %v783_v23 }
  0x8a   :  { %720 = vmatprep.subr.bf16.mxu0 %v945_v0 }
  0x8d   :  { %721 = vmatpush3.bf16.msra.mxu0 %v784_v24 }
  0x8e   :  { %722 = vmatprep.subr.bf16.mxu0 %v945_v0 }
  0x91   :  { %723 = vmatpush3.bf16.msra.mxu0 %v785_v25 }
  0x92   :  { %724 = vmatprep.subr.bf16.mxu0 %v945_v0 }
  0x95   :  { %725 = vmatpush3.bf16.msra.mxu0 %v786_v36 }
  0x96   :  { %726 = vmatprep.subr.bf16.mxu0 %v945_v0 }
  0x99   :  { %727 = vmatpush3.bf16.msra.mxu0 %v787_v37 }
 0x14f   :  { %v210_v27 = vpop.f32.mrb[0].mxu0 }
 0x150   :  { %v211_v28 = vadd.f32 %v591_v26, %v210_v27  ;;  %v690_v29 = vpop.f32.mrb[1].mxu0 }
 0x151   :  { %v213_v30 = vpop.f32.mrb[2].mxu0 }
 0x152   :  { %v214_v31 = vadd.f32 %v591_v26, %v213_v30  ;;  %v691_v32 = vpop.f32.mrb[3].mxu0  ;;  %v217_v33 = vmax.f32 %v211_v28, 0.0 }
 0x154   :  { %v218_v34 = vmax.f32 %v214_v31, 0.0 }
 0x156   :  { %v219_v35 = vpack.c.bf16 %v218_v34, %v217_v33 }
 0x158   :  { %709 = vmatmul.mubr.bf16.vlgmr.msra.gmra.mrb[0].mxu1 %v219_v35 }
 0x159   :  { %748 = vmatprep.mubr.msk.bf16.mxu1 %vm946_vm0, %v945_v0  ;;  %733 = vmatpush3.bf16.msra.mxu1 %v788_v38 }
 0x15a   :  { %734 = vmatprep.subr.bf16.mxu1 %v945_v0 }
 0x15d   :  { %735 = vmatpush3.bf16.msra.mxu1 %v789_v39 }
 0x15e   :  { %736 = vmatprep.subr.bf16.mxu1 %v945_v0 }
 0x161   :  { %737 = vmatpush3.bf16.msra.mxu1 %v790_v40 }
 0x162   :  { %738 = vmatprep.subr.bf16.mxu1 %v945_v0 }
 0x165   :  { %739 = vmatpush3.bf16.msra.mxu1 %v791_v41 }
 0x166   :  { %740 = vmatprep.subr.bf16.mxu1 %v945_v0 }
 0x169   :  { %741 = vmatpush3.bf16.msra.mxu1 %v792_v42 }
 0x16a   :  { %742 = vmatprep.subr.bf16.mxu1 %v945_v0 }
 0x16d   :  { %743 = vmatpush3.bf16.msra.mxu1 %v793_v43 }
 0x16e   :  { %744 = vmatprep.subr.bf16.mxu1 %v945_v0 }
 0x171   :  { %745 = vmatpush3.bf16.msra.mxu1 %v794_v54 }
 0x172   :  { %746 = vmatprep.subr.bf16.mxu1 %v945_v0  ;;  %v618_v0 = vld [vmem:[%s1145_s8] ss:$0 sm:$0xff] }
 0x175   :  { %747 = vmatpush3.bf16.msra.mxu1 %v795_v55 }
 0x22b   :  { %v325_v45 = vpop.f32.mrb[0].mxu1 }
 0x22c   :  { %v326_v46 = vadd.f32 %v600_v44, %v325_v45  ;;  %v710_v47 = vpop.f32.mrb[1].mxu1 }
 0x22d   :  { %v328_v48 = vpop.f32.mrb[2].mxu1 }
 0x22e   :  { %v329_v49 = vadd.f32 %v600_v44, %v328_v48  ;;  %v711_v50 = vpop.f32.mrb[3].mxu1  ;;  %v332_v51 = vmax.f32 %v326_v46, 0.0 }
 0x230   :  { %v333_v52 = vmax.f32 %v329_v49, 0.0 }
 0x232   :  { %v334_v53 = vpack.c.bf16 %v333_v52, %v332_v51 }
 0x234   :  { %729 = vmatmul.mubr.bf16.vlgmr.msra.gmra.mrb[4].mxu0 %v334_v53 }
 0x307   :  { %v440_v57 = vpop.f32.mrb[4].mxu0 }
 0x308   :  { %v441_v58 = vadd.f32 %v609_v56, %v440_v57  ;;  %v730_v59 = vpop.f32.mrb[5].mxu0 }
 0x309   :  { %v443_v60 = vpop.f32.mrb[6].mxu0 }
 0x30a   :  { %v444_v61 = vadd.f32 %v609_v56, %v443_v60  ;;  %v731_v62 = vpop.f32.mrb[7].mxu0  ;;  %v447_v63 = vmax.f32 %v441_v58, 0.0 }
 0x30c   :  { %v448_v1 = vmax.f32 %v444_v61, 0.0 }
 0x30e   :  { %v449_v2 = vpack.c.bf16 %v448_v1, %v447_v63 }
 0x310   :  { %749 = vmatmul.mubr.bf16.vlgmr.msra.gmra.mrb[4].mxu1 %v449_v2 }
 0x3e3   :  { %v555_v3 = vpop.f32.mrb[4].mxu1 }
 0x3e4   :  { %v750_v4 = vpop.f32.mrb[5].mxu1  ;;  %v556_v6 = vadd.f32 %v618_v0, %v555_v3 }
 0x3e5   :  { %v558_v5 = vpop.f32.mrb[6].mxu1 }
 0x3e6   :  { %v559_v7 = vadd.f32 %v618_v0, %v558_v5  ;;  %v751_v8 = vpop.f32.mrb[7].mxu1 }
 0x3e8   :  { %v634_v9 = vpack.c.bf16 %v559_v7, %v556_v6 }
 0x3ea   :  { %635 = vst [vmem:[#allocation11] sm:$0xff] %v634_v9  }
 0x3eb   :  { %917 = shalt.err (!%p914_p2)
}
 0x3ec   :  { %s918_s16 = scalar_lea.hbm %s1146_s9, 128 }
 0x3ed   :  { %p919_p3 = scmp.ne.s32.totalorder %s1146_s9, %s918_s16  ;;  %p922_p4 = scmp.lt.u32.totalorder %s918_s16, %s1146_s9 }
 0x3ef   :  { %p924_p5 = pnand %p922_p4, %p919_p3 }
 0x3f1   :  { %927 = shalt.err (!%p924_p5)
}
 0x3f2   :  { %583 = dma.vmem_to_hbm [thread:$0]  %s578_s14, 128, %s1146_s9, [#allocation4], %s937_s19, %s937_s19, %s938_s20  }
 0x3f3   :  { %934 = dma.done.wait [#allocation4], 128  }
 0x3f4   :  { %935 = vsyncadd [#allocation4], 4294967168 }
 0x3f5   :  { %587 = vsyncpa [#allocation3], 1 }
 0x3f6   :  { %588 = vsyncpa [#allocation6], 1 }
 0x3f7   :  { %589 = vsyncpa [#allocation9], 1 }
 0x3f8   :  { %590 = vsyncpa [#allocation4], 1 }

</bundles_post_ra>
